<compile_context>
chip_gen: v7x
topology: tpu7x:2x2x1
jax: 0.10.0
libtpu: 0.0.40
codegen_flags: <defaults>
</compile_context>

<pallas_src>
from functools import partial

import numpy as np
import jax
import jax.numpy as jnp
from jax.experimental import pallas as pl
from jax.experimental.pallas import tpu as pltpu


# ----------------------------------------------------------------------------
# Tiling helpers
# ----------------------------------------------------------------------------
def _pick_tile(dim, target, align):
    """Largest aligned block <= target that exactly divides dim, else full dim.

    Returning the full dim keeps the (8,128) rule satisfied (block == array dim)
    and is only hit for small / odd shapes.
    """
    if dim <= target:
        return dim
    t = (target // align) * align
    while t >= align:
        if dim % t == 0:
            return t
        t -= align
    return dim


_VMEM_LIMIT = 48 * 1024 * 1024  # fits v5e/v6e (128 MiB) and v7x (64 MiB) with headroom


# ----------------------------------------------------------------------------
# Tiled matmul kernel: out = act(x @ w + b) [+ residual]
# ----------------------------------------------------------------------------
def _linear_kernel(x_ref, w_ref, b_ref, *rest, activation, has_residual):
    if has_residual:
        r_ref, o_ref, acc_ref = rest
    else:
        o_ref, acc_ref = rest
        r_ref = None

    @pl.when(pl.program_id(2) == 0)
    def _():
        acc_ref[...] = jnp.zeros_like(acc_ref)

    # bf16 x bf16 -> f32 accumulation on the MXU.
    acc_ref[...] += jnp.dot(x_ref[...], w_ref[...],
                            preferred_element_type=jnp.float32)

    @pl.when(pl.program_id(2) == pl.num_programs(2) - 1)
    def _():
        y = acc_ref[...] + b_ref[...].astype(jnp.float32)
        if activation == "gelu":  # exact erf GELU, matching torch.nn.functional.gelu
            y = 0.5 * y * (1.0 + jax.lax.erf(y * np.float32(1.0 / np.sqrt(2.0))))
        if r_ref is not None:     # fused residual add (epilogue, free under MXU slack)
            y = y + r_ref[...].astype(jnp.float32)
        o_ref[...] = y.astype(o_ref.dtype)


def linear(x, w, b, residual=None, activation=None):
    """x: [M, K] (bf16), w: [K, N] (bf16), b: [N] (f32) -> [M, N] (bf16)."""
    M, K = x.shape
    Kw, Nf = w.shape
    assert K == Kw
    tm = _pick_tile(M, 256, 8)
    tn = _pick_tile(Nf, 256, 128)
    tk = _pick_tile(K, 512, 128)
    grid = (M // tm, Nf // tn, K // tk)

    in_specs = [
        pl.BlockSpec((tm, tk), lambda i, j, k: (i, k)),
        pl.BlockSpec((tk, tn), lambda i, j, k: (k, j)),
        pl.BlockSpec((1, tn), lambda i, j, k: (0, j)),
    ]
    operands = [x, w, b.reshape(1, Nf)]
    if residual is not None:
        in_specs.append(pl.BlockSpec((tm, tn), lambda i, j, k: (i, j)))
        operands.append(residual)

    itemsize = 2  # bf16 operands / output
    flops = 2 * M * K * Nf
    bytes_accessed = (M * K + K * Nf + M * Nf) * itemsize + Nf * 4
    if residual is not None:
        bytes_accessed += M * Nf * itemsize
    transcendentals = M * Nf if activation == "gelu" else 0

    return pl.pallas_call(
        partial(_linear_kernel, activation=activation,
                has_residual=residual is not None),
        grid=grid,
        in_specs=in_specs,
        out_specs=pl.BlockSpec((tm, tn), lambda i, j, k: (i, j)),
        out_shape=jax.ShapeDtypeStruct((M, Nf), jnp.bfloat16),
        scratch_shapes=[pltpu.VMEM((tm, tn), jnp.float32)],
        compiler_params=pltpu.CompilerParams(
            dimension_semantics=("parallel", "parallel", "arbitrary"),
            vmem_limit_bytes=_VMEM_LIMIT),
        cost_estimate=pl.CostEstimate(flops=int(flops),
                                      transcendentals=int(transcendentals),
                                      bytes_accessed=int(bytes_accessed)),
    )(*operands)


# ----------------------------------------------------------------------------
# Row-tiled LayerNorm
# ----------------------------------------------------------------------------
def _layernorm_kernel(x_ref, g_ref, b_ref, o_ref):
    x = x_ref[...].astype(jnp.float32)
    mu = jnp.mean(x, axis=-1, keepdims=True)
    xc = x - mu
    var = jnp.mean(xc * xc, axis=-1, keepdims=True)
    y = xc * jax.lax.rsqrt(var + 1e-5)
    o_ref[...] = (y * g_ref[...] + b_ref[...]).astype(o_ref.dtype)


def layernorm(x, g, b):
    """x: [M, D], g/b: [D] -> [M, D] bf16 (eps=1e-5, matching nn.LayerNorm)."""
    M, D = x.shape
    tm = _pick_tile(M, 1024, 8)
    return pl.pallas_call(
        _layernorm_kernel,
        grid=(M // tm,),
        in_specs=[pl.BlockSpec((tm, D), lambda i: (i, 0)),
                  pl.BlockSpec((1, D), lambda i: (0, 0)),
                  pl.BlockSpec((1, D), lambda i: (0, 0))],
        out_specs=pl.BlockSpec((tm, D), lambda i: (i, 0)),
        out_shape=jax.ShapeDtypeStruct((M, D), jnp.bfloat16),
        compiler_params=pltpu.CompilerParams(
            dimension_semantics=("parallel",),
            vmem_limit_bytes=_VMEM_LIMIT),
    )(x, g.reshape(1, D), b.reshape(1, D))


# ----------------------------------------------------------------------------
# Flash-attention (online softmax, tiled over q and kv)
# ----------------------------------------------------------------------------
def _flash_attn_kernel(q_ref, k_ref, v_ref, o_ref, m_sc, l_sc, acc_sc, *, scale):
    kv = pl.program_id(2)

    @pl.when(kv == 0)
    def _():
        m_sc[...] = jnp.full_like(m_sc, -jnp.inf)
        l_sc[...] = jnp.zeros_like(l_sc)
        acc_sc[...] = jnp.zeros_like(acc_sc)

    q = q_ref[...]                                    # (tq, hd) bf16
    k = k_ref[...]                                    # (tkv, hd) bf16
    s = jax.lax.dot_general(q, k, (((1,), (1,)), ((), ())),
                            preferred_element_type=jnp.float32) * scale   # (tq, tkv)

    m_prev = m_sc[...]
    m_new = jnp.maximum(m_prev, jnp.max(s, axis=-1, keepdims=True))
    alpha = jnp.exp(m_prev - m_new)
    p = jnp.exp(s - m_new)
    l_sc[...] = alpha * l_sc[...] + jnp.sum(p, axis=-1, keepdims=True)
    acc_sc[...] = alpha * acc_sc[...] + jnp.dot(p.astype(v_ref.dtype), v_ref[...],
                                                preferred_element_type=jnp.float32)
    m_sc[...] = m_new

    @pl.when(kv == pl.num_programs(2) - 1)
    def _():
        o_ref[...] = (acc_sc[...] *
                      pl.reciprocal(l_sc[...], approx=True)).astype(o_ref.dtype)


def flash_attention(q, k, v):
    """q/k/v: [B*H, T, hd] bf16 -> [B*H, T, hd] bf16 dense softmax attention."""
    BH, T, hd = q.shape
    scale = float(1.0 / np.sqrt(hd))
    tq = _pick_tile(T, 256, 8)
    tkv = _pick_tile(T, 256, 8)
    n_q, n_kv = T // tq, T // tkv

    q_spec = pl.BlockSpec((None, tq, hd), lambda b, qi, ki: (b, qi, 0))
    kv_spec = pl.BlockSpec((None, tkv, hd), lambda b, qi, ki: (b, ki, 0))

    flops = 4 * BH * T * T * hd
    bytes_accessed = 4 * BH * T * hd * 2
    return pl.pallas_call(
        partial(_flash_attn_kernel, scale=scale),
        grid=(BH, n_q, n_kv),
        in_specs=[q_spec, kv_spec, kv_spec],
        out_specs=pl.BlockSpec((None, tq, hd), lambda b, qi, ki: (b, qi, 0)),
        out_shape=jax.ShapeDtypeStruct((BH, T, hd), q.dtype),
        scratch_shapes=[pltpu.VMEM((tq, 1), jnp.float32),
                        pltpu.VMEM((tq, 1), jnp.float32),
                        pltpu.VMEM((tq, hd), jnp.float32)],
        compiler_params=pltpu.CompilerParams(
            dimension_semantics=("parallel", "parallel", "arbitrary"),
            vmem_limit_bytes=_VMEM_LIMIT),
        cost_estimate=pl.CostEstimate(flops=int(flops),
                                      transcendentals=int(BH * T * T),
                                      bytes_accessed=int(bytes_accessed)),
    )(q, k, v)


# ----------------------------------------------------------------------------
# Parameter construction (deterministic, matching the module's init scheme)
# ----------------------------------------------------------------------------
def get_1d_sincos_pos_embed_from_grid(embed_dim, pos):
    omega = np.arange(embed_dim // 2, dtype=np.float64) / (embed_dim / 2.0)
    omega = 1.0 / 10000 ** omega
    out = np.einsum("m,d->md", pos.reshape(-1), omega)
    return np.concatenate([np.sin(out), np.cos(out)], axis=1)


def get_2d_sincos_pos_embed(embed_dim, grid_size, cls_token=False):
    grid_h = np.arange(grid_size, dtype=np.float32)
    grid_w = np.arange(grid_size, dtype=np.float32)
    grid = np.stack(np.meshgrid(grid_w, grid_h), axis=0).reshape(2, 1, grid_size, grid_size)
    emb_h = get_1d_sincos_pos_embed_from_grid(embed_dim // 2, grid[0])
    emb_w = get_1d_sincos_pos_embed_from_grid(embed_dim // 2, grid[1])
    pos_embed = np.concatenate([emb_h, emb_w], axis=1)
    if cls_token:
        pos_embed = np.concatenate([np.zeros([1, embed_dim]), pos_embed], axis=0)
    return pos_embed.astype(np.float32)


def xavier_uniform(key, fan_in, fan_out):
    # torch xavier_uniform_ on a (out, in) weight; stored here as (in, out) for x @ W.
    limit = float(np.sqrt(6.0 / (fan_in + fan_out)))
    return jax.random.uniform(key, (fan_in, fan_out), jnp.float32, -limit, limit)


def init_params(key, cfg):
    D, Din = cfg["embed_dim"], cfg["in_chans"]
    hidden = int(cfg["mlp_ratio"] * D)
    keys = iter(jax.random.split(key, 8 + 8 * cfg["depth"]))

    params = {
        # PatchEmbed: Linear(in_chans, embed_dim), xavier weights, zero bias
        "patch_w": xavier_uniform(next(keys), Din, D).astype(jnp.bfloat16),
        "patch_b": jnp.zeros((D,), jnp.float32),
        # cls token ~ N(0, 0.02); pos_embed = 2D sincos with cls row of zeros
        "cls_token": 0.02 * jax.random.normal(next(keys), (D,), jnp.float32),
        "pos_embed": jnp.asarray(
            get_2d_sincos_pos_embed(D, cfg["slide_ngrids"], cls_token=True)),
        # encoder-final LN and the module-level self.norm (weight=1, bias=0)
        "enc_ln_g": jnp.ones((D,), jnp.float32),
        "enc_ln_b": jnp.zeros((D,), jnp.float32),
        "norm_g": jnp.ones((D,), jnp.float32),
        "norm_b": jnp.zeros((D,), jnp.float32),
        "layers": [],
    }
    for _ in range(cfg["depth"]):
        wq = xavier_uniform(next(keys), D, D)
        wk = xavier_uniform(next(keys), D, D)
        wv = xavier_uniform(next(keys), D, D)
        layer = {
            "ln1_g": jnp.ones((D,), jnp.float32), "ln1_b": jnp.zeros((D,), jnp.float32),
            # fused QKV projection: [D, 3D]
            "w_qkv": jnp.concatenate([wq, wk, wv], axis=1).astype(jnp.bfloat16),
            "b_qkv": jnp.zeros((3 * D,), jnp.float32),
            "wo": xavier_uniform(next(keys), D, D).astype(jnp.bfloat16),
            "bo": jnp.zeros((D,), jnp.float32),
            "ln2_g": jnp.ones((D,), jnp.float32), "ln2_b": jnp.zeros((D,), jnp.float32),
            "w1": xavier_uniform(next(keys), D, hidden).astype(jnp.bfloat16),
            "b1": jnp.zeros((hidden,), jnp.float32),
            "w2": xavier_uniform(next(keys), hidden, D).astype(jnp.bfloat16),
            "b2": jnp.zeros((D,), jnp.float32),
        }
        params["layers"].append(layer)
    return params


# ----------------------------------------------------------------------------
# Forward pass (wrapper glue around the Pallas kernels)
# ----------------------------------------------------------------------------
def longnet_vit_forward(params, x, coords, cfg, global_pool=False):
    N, L, Din = x.shape
    D, H = cfg["embed_dim"], cfg["num_heads"]
    hd = D // H

    # --- coords_to_pos + positional embedding gather ---
    pe = params["pos_embed"]                                              # [P+1, D]
    c = jnp.floor(coords / cfg["tile_size"])
    pos = (c[..., 0] * cfg["slide_ngrids"] + c[..., 1]).astype(jnp.int32) + 1   # [N, L]
    pe_rows = jnp.take(pe, pos, axis=0).reshape(N * L, D).astype(jnp.bfloat16)

    # --- PatchEmbed (Linear) with the pos-embed add fused into the epilogue ---
    h = linear(x.reshape(N * L, Din).astype(jnp.bfloat16),
               params["patch_w"], params["patch_b"], residual=pe_rows)
    h = h.reshape(N, L, D)

    # --- cls token (+ its pos embed) prepended ---
    cls = (params["cls_token"] + pe[0]).astype(jnp.bfloat16)[None, None, :]
    h = jnp.concatenate([jnp.broadcast_to(cls, (N, 1, D)), h], axis=1)    # [N, T, D]
    T = L + 1
    h = h.reshape(N * T, D)

    # --- LongNet encoder: pre-norm transformer blocks ---
    for layer in params["layers"]:
        y = layernorm(h, layer["ln1_g"], layer["ln1_b"])
        qkv = linear(y, layer["w_qkv"], layer["b_qkv"])                   # [N*T, 3D]
        qkv = qkv.reshape(N, T, 3, H, hd).transpose(2, 0, 3, 1, 4)        # [3, N, H, T, hd]
        q = qkv[0].reshape(N * H, T, hd)
        k = qkv[1].reshape(N * H, T, hd)
        v = qkv[2].reshape(N * H, T, hd)
        o = flash_attention(q, k, v)                                      # [N*H, T, hd]
        o = o.reshape(N, H, T, hd).transpose(0, 2, 1, 3).reshape(N * T, D)
        h = linear(o, layer["wo"], layer["bo"], residual=h)               # residual fused

        y = layernorm(h, layer["ln2_g"], layer["ln2_b"])
        y = linear(y, layer["w1"], layer["b1"], activation="gelu")
        h = linear(y, layer["w2"], layer["b2"], residual=h)               # residual fused

    # encoder-final LayerNorm (pre-norm encoder)
    h = layernorm(h, params["enc_ln_g"], params["enc_ln_b"])

    # --- LongNetViT head ---
    if global_pool:
        pooled = h.reshape(N, T, D)[:, 1:, :].astype(jnp.float32).mean(axis=1)  # [N, D]
        outcome = layernorm(pooled.astype(jnp.bfloat16),
                            params["norm_g"], params["norm_b"])
    else:
        hn = layernorm(h, params["norm_g"], params["norm_b"]).reshape(N, T, D)
        outcome = hn[:, 0]                                                # [N, D]
    return [outcome.astype(jnp.float32)]


# ----------------------------------------------------------------------------
if __name__ == "__main__":
    cfg = dict(
        in_chans=128,       # stands in for the 1536-dim tile encoder output
        embed_dim=64,
        depth=2,
        num_heads=4,
        mlp_ratio=4.0,
        slide_ngrids=16,
        tile_size=256,
    )

    key = jax.random.PRNGKey(0)
    k_par, k_x, k_c = jax.random.split(key, 3)

    params = init_params(k_par, cfg)

    N, L = 2, 8
    x = jax.random.normal(k_x, (N, L, cfg["in_chans"]), jnp.float32)
    coords = jax.random.uniform(
        k_c, (N, L, 2), jnp.float32,
        minval=0.0, maxval=float(cfg["slide_ngrids"] * cfg["tile_size"]),
    )

    outs = longnet_vit_forward(params, x, coords, cfg, global_pool=False)
    outs = jax.block_until_ready(outs)
    assert outs[0].shape == (N, cfg["embed_dim"])
    assert bool(jnp.all(jnp.isfinite(outs[0])))
    print("KERNEL_OK")
</pallas_src>

<mosaic_0001>
module attributes {stable_mosaic.version = 11 : i64} {
  func.func @_linear_kernel(%arg0: i32, %arg1: i32, %arg2: i32, %arg3: memref<16x128xbf16, #tpu.memory_space<vmem>>, %arg4: memref<128x64xbf16, #tpu.memory_space<vmem>>, %arg5: memref<1x64xf32, #tpu.memory_space<vmem>>, %arg6: memref<16x64xbf16, #tpu.memory_space<vmem>>, %arg7: memref<16x64xbf16, #tpu.memory_space<vmem>>, %arg8: memref<16x64xf32, #tpu.memory_space<vmem>>) attributes {dimension_semantics = [#tpu.dimension_semantics<parallel>, #tpu.dimension_semantics<parallel>, #tpu.dimension_semantics<arbitrary>], iteration_bounds = array<i64: 1, 1, 1>, scalar_prefetch = 0 : i64, scratch_operands = 1 : i64, tpu.core_type = #tpu.core_type<tc>, window_params = [{transform_indices = @transform_0, window_bounds = array<i64: 16, 128>}, {transform_indices = @transform_1, window_bounds = array<i64: 128, 64>}, {transform_indices = @transform_2, window_bounds = array<i64: 1, 64>}, {transform_indices = @transform_3, window_bounds = array<i64: 16, 64>}, {transform_indices = @transform_4, window_bounds = array<i64: 16, 64>}]} {
    %c0_i32 = arith.constant 0 : i32
    %0 = arith.cmpi eq, %arg2, %c0_i32 : i32
    %1 = arith.extui %0 : i1 to i32
    %c0_i32_0 = arith.constant 0 : i32
    %2 = arith.cmpi ne, %1, %c0_i32_0 : i32
    scf.if %2 {
      %cst_10 = arith.constant 0.000000e+00 : f32
      %12 = vector.broadcast %cst_10 : f32 to vector<16x64xf32>
      %c0_11 = arith.constant 0 : index
      %c0_12 = arith.constant 0 : index
      %13 = vector.load %arg8[%c0_11, %c0_12] : memref<16x64xf32, #tpu.memory_space<vmem>>, vector<16x64xf32>
      tpu.vector_store %arg8[%c0_11, %c0_12], %12 {strides = array<i32>} : memref<16x64xf32, #tpu.memory_space<vmem>>, vector<16x64xf32>,
    } else {
    }
    %c0 = arith.constant 0 : index
    %c0_1 = arith.constant 0 : index
    %3 = vector.load %arg8[%c0, %c0_1] : memref<16x64xf32, #tpu.memory_space<vmem>>, vector<16x64xf32>
    %c0_2 = arith.constant 0 : index
    %c0_3 = arith.constant 0 : index
    %4 = vector.load %arg3[%c0_2, %c0_3] : memref<16x128xbf16, #tpu.memory_space<vmem>>, vector<16x128xbf16>
    %c0_4 = arith.constant 0 : index
    %c0_5 = arith.constant 0 : index
    %5 = vector.load %arg4[%c0_4, %c0_5] : memref<128x64xbf16, #tpu.memory_space<vmem>>, vector<128x64xbf16>
    %cst = arith.constant dense<0.000000e+00> : vector<16x64xf32>
    %6 = tpu.matmul %4, %5, %cst {dimension_numbers = #tpu.dot_dimension_numbers<[1], [0], [0], [1], [0, 0, 1, 1], [], []>} : vector<16x128xbf16>, vector<128x64xbf16>, vector<16x64xf32> -> vector<16x64xf32>
    %7 = arith.addf %3, %6 : vector<16x64xf32>
    %c0_6 = arith.constant 0 : index
    %c0_7 = arith.constant 0 : index
    %8 = vector.load %arg8[%c0_6, %c0_7] : memref<16x64xf32, #tpu.memory_space<vmem>>, vector<16x64xf32>
    tpu.vector_store %arg8[%c0_6, %c0_7], %7 {strides = array<i32>} : memref<16x64xf32, #tpu.memory_space<vmem>>, vector<16x64xf32>,
    %c0_i32_8 = arith.constant 0 : i32
    %9 = arith.cmpi eq, %arg2, %c0_i32_8 : i32
    %10 = arith.extui %9 : i1 to i32
    %c0_i32_9 = arith.constant 0 : i32
    %11 = arith.cmpi ne, %10, %c0_i32_9 : i32
    scf.if %11 {
      %c0_10 = arith.constant 0 : index
      %c0_11 = arith.constant 0 : index
      %12 = vector.load %arg8[%c0_10, %c0_11] : memref<16x64xf32, #tpu.memory_space<vmem>>, vector<16x64xf32>
      %c0_12 = arith.constant 0 : index
      %c0_13 = arith.constant 0 : index
      %13 = vector.load %arg5[%c0_12, %c0_13] : memref<1x64xf32, #tpu.memory_space<vmem>>, vector<1x64xf32>
      %14 = vector.broadcast %13 : vector<1x64xf32> to vector<16x64xf32>
      %15 = arith.addf %12, %14 : vector<16x64xf32>
      %c0_14 = arith.constant 0 : index
      %c0_15 = arith.constant 0 : index
      %16 = vector.load %arg6[%c0_14, %c0_15] : memref<16x64xbf16, #tpu.memory_space<vmem>>, vector<16x64xbf16>
      %17 = arith.extf %16 : vector<16x64xbf16> to vector<16x64xf32>
      %18 = arith.addf %15, %17 : vector<16x64xf32>
      %19 = arith.truncf %18 : vector<16x64xf32> to vector<16x64xbf16>
      %c0_16 = arith.constant 0 : index
      %c0_17 = arith.constant 0 : index
      %20 = vector.load %arg7[%c0_16, %c0_17] : memref<16x64xbf16, #tpu.memory_space<vmem>>, vector<16x64xbf16>
      tpu.vector_store %arg7[%c0_16, %c0_17], %19 {strides = array<i32>} : memref<16x64xbf16, #tpu.memory_space<vmem>>, vector<16x64xbf16>,
    } else {
    }
    return
  }
  func.func @transform_0(%arg0: i32, %arg1: i32, %arg2: i32) -> (i32, i32) {
    %c0_i32 = arith.constant 0 : i32
    return %arg0, %arg2 : i32, i32
  }
  func.func @transform_1(%arg0: i32, %arg1: i32, %arg2: i32) -> (i32, i32) {
    %c0_i32 = arith.constant 0 : i32
    return %arg2, %arg1 : i32, i32
  }
  func.func @transform_2(%arg0: i32, %arg1: i32, %arg2: i32) -> (i32, i32) {
    %c0_i32 = arith.constant 0 : i32
    %c0_i32_0 = arith.constant 0 : i32
    return %c0_i32, %arg1 : i32, i32
  }
  func.func @transform_3(%arg0: i32, %arg1: i32, %arg2: i32) -> (i32, i32) {
    %c0_i32 = arith.constant 0 : i32
    return %arg0, %arg1 : i32, i32
  }
  func.func @transform_4(%arg0: i32, %arg1: i32, %arg2: i32) -> (i32, i32) {
    %c0_i32 = arith.constant 0 : i32
    return %arg0, %arg1 : i32, i32
  }
}

</mosaic_0001>

<bundles_post_ra>
// kernel: tpu_custom_call.1
= control target key start
LH: loop header
LB: loop body
LE: loop exit
PB: predicated region body
PF: predicated region fallthrough
CT: control target
= control target key end

     0   :  { %v278_v1 = vmov 0.0   ;;  %vm279_vm0 = vmmov 0   ;;  %vm23_vm1 = vcmask 523264   ;;  %s357_s0 = inlined_call_operand.vmem [shape: bf16[16,128], index: 0, kind: input, shape index: {}]   ;;  %s358_s1 = inlined_call_operand.vmem [shape: bf16[128,64], index: 1, kind: input, shape index: {}]   ;;  %s359_s2 = inlined_call_operand.vmem [shape: f32[1,64], index: 2, kind: input, shape index: {}]   ;;  %s360_s3 = inlined_call_operand.vmem [shape: bf16[16,64], index: 3, kind: input, shape index: {}]   ;;  %s361_s4 = inlined_call_operand.hbm [shape: bf16[16,64], index: 4, kind: output, shape index: {}]  }
   0x1   :  { %v245_v0 = vld [vmem:[%s358_s1] sm:$0xff]   ;;  %220 = vmatprep.subr.bf16.mxu0 %v278_v1  ;;  %v246_v2 = vld [vmem:[%s358_s1 + $0x8] sm:$0xff]   ;;  %236 = vmatprep.mubr.msk.bf16.mxu0 %vm279_vm0, %v278_v1  ;;  %24 = vst.msk [vmem:[#allocation2] sm:$0xff] %vm23_vm1, %v278_v1  ;;  %25 = vst.msk [vmem:[#allocation2 + $0x8] sm:$0xff] %vm23_vm1, %v278_v1 }
   0x2   :  { %221 = vmatpush3.bf16.msra.mxu0 %v245_v0  ;;  %v247_v3 = vld [vmem:[%s358_s1 + $0x10] sm:$0xff]  }
   0x3   :  { %222 = vmatprep.subr.bf16.mxu0 %v278_v1 }
   0x6   :  { %223 = vmatpush3.bf16.msra.mxu0 %v246_v2 }
   0x7   :  { %224 = vmatprep.subr.bf16.mxu0 %v278_v1 }
   0x8   :  { %9 = vsyncpa [#allocation4], 0  ;;  %v248_v4 = vld [vmem:[%s358_s1 + $0x18] sm:$0xff]   ;;  %v249_v5 = vld [vmem:[%s358_s1 + $0x20] sm:$0xff]   ;;  %s280_s9 = smov [#allocation3]   ;;  %vm174_vm2 = vcmask 519168  }
   0x9   :  { %v250_v6 = vld [vmem:[%s358_s1 + $0x28] sm:$0xff]   ;;  %v251_v7 = vld [vmem:[%s358_s1 + $0x30] sm:$0xff]   ;;  %v252_v8 = vld [vmem:[%s358_s1 + $0x38] sm:$0xff]   ;;  %s182_s10 = sshll.u32 %s280_s9, 4  ;;  %s183_s10 = int_to_ptr.vmem [resolvable:$true] %s182_s10 }
   0xa   :  { %225 = vmatpush3.bf16.msra.mxu0 %v247_v3  ;;  %v253_v9 = vld [vmem:[%s357_s0] sm:$0xff]   ;;  %v27_v12 = vld [vmem:[#allocation2 + $0x8] sm:$0xff]  ;;  %p259_p1 = scmp.lt.s32.totalorder %s183_s10, %s183_s10 }
   0xb   :  { %226 = vmatprep.subr.bf16.mxu0 %v278_v1  ;;  %v26_v10 = vld [vmem:[#allocation2] sm:$0xff] }
   0xc   :  { %v208_v18 = vld [vmem:[%s360_s3] sm:$0xff]   ;;  %s254_s3 = scalar_lea.vmem %s183_s10, 128 }
   0xd   :  { %v202_v19 = vld [vmem:[%s359_s2] ss:$0 sm:$0xff]  ;;  %v209_v20 = vunpack.c.l.bf16 %v208_v18  ;;  %v210_v23 = vunpack.c.h.bf16 %v208_v18  ;;  %p255_p0 = scmp.ne.s32.totalorder %s183_s10, %s254_s3  ;;  %p260_p2 = scmp.lt.s32.totalorder %s254_s3, %s254_s3 }
   0xe   :  { %227 = vmatpush3.bf16.msra.mxu0 %v248_v4 }
   0xf   :  { %228 = vmatprep.subr.bf16.mxu0 %v278_v1  ;;  %p261_p3 = por %p260_p2, %p259_p1 }
  0x11   :  { %p262_p4 = pnand %p261_p3, %p255_p0 }
  0x12   :  { %229 = vmatpush3.bf16.msra.mxu0 %v249_v5 }
  0x13   :  { %230 = vmatprep.subr.bf16.mxu0 %v278_v1 }
  0x16   :  { %231 = vmatpush3.bf16.msra.mxu0 %v250_v6 }
  0x17   :  { %232 = vmatprep.subr.bf16.mxu0 %v278_v1 }
  0x1a   :  { %233 = vmatpush3.bf16.msra.mxu0 %v251_v7 }
  0x1b   :  { %234 = vmatprep.subr.bf16.mxu0 %v278_v1 }
  0x1e   :  { %235 = vmatpush3.bf16.msra.mxu0 %v252_v8 }
  0x21   :  { %237 = vmatmul.mubr.bf16.vlgmr.msra.gmra.mrb[0].mxu0 %v253_v9 }
  0xf4   :  { %v134_v11 = vpop.f32.mrb[0].mxu0 }
  0xf5   :  { %v141_v13 = vadd.f32 %v134_v11, %v26_v10  ;;  %v238_v14 = vpop.f32.mrb[1].mxu0 }
  0xf6   :  { %v137_v15 = vpop.f32.mrb[2].mxu0 }
  0xf7   :  { %144 = vst.msk [vmem:[#allocation2] sm:$0xff] %vm23_vm1, %v141_v13  ;;  %v142_v16 = vadd.f32 %v137_v15, %v27_v12  ;;  %v239_v17 = vpop.f32.mrb[3].mxu0 }
  0xf9   :  { %145 = vst.msk [vmem:[#allocation2 + $0x8] sm:$0xff] %vm23_vm1, %v142_v16 }
  0xfe   :  { %v149_v21 = vld [vmem:[#allocation2] sm:$0xff] }
  0xff   :  { %v158_v22 = vadd.f32 %v202_v19, %v149_v21 }
 0x100   :  { %v150_v24 = vld [vmem:[#allocation2 + $0x8] sm:$0xff] }
 0x101   :  { %v159_v25 = vadd.f32 %v202_v19, %v150_v24  ;;  %v164_v26 = vadd.f32 %v209_v20, %v158_v22 }
 0x103   :  { %v165_v27 = vadd.f32 %v210_v23, %v159_v25  ;;  %v205_v28 = vpack.c.bf16 %v164_v26, %v164_v26 }
 0x105   :  { %v206_v29 = vpack.c.bf16 %v165_v27, %v165_v27  ;;  %175 = vst.msk [vmem:[#allocation3] sm:$0xf] %vm174_vm2, %v205_v28 }
 0x107   :  { %176 = vst.msk [vmem:[#allocation3 + $0x4] sm:$0xf] %vm174_vm2, %v206_v29 }
 0x108   :  { %265 = shalt.err (!%p262_p4)
}
 0x109   :  { %s266_s12 = scalar_lea.hbm %s361_s4, 128 }
 0x10a   :  { %p267_p5 = scmp.ne.s32.totalorder %s361_s4, %s266_s12  ;;  %p270_p6 = scmp.lt.u32.totalorder %s266_s12, %s361_s4 }
 0x10c   :  { %p272_p7 = pnand %p270_p6, %p267_p5 }
 0x10e   :  { %275 = shalt.err (!%p272_p7)
}
 0x10f   :  { %s281_s17 = smov 64   ;;  %s282_s18 = smov 4  }
 0x110   :  { %188 = dma.vmem_to_hbm [thread:$0]  %s183_s10, 128, %s361_s4, [#allocation4], %s281_s17, %s281_s17, %s282_s18  }
 0x111   :  { %276 = dma.done.wait [#allocation4], 128  }
 0x112   :  { %277 = vsyncadd [#allocation4], 4294967168 }
 0x113   :  { %192 = vsyncpa [#allocation4], 1 }

</bundles_post_ra>
